<compile_context>
chip_gen: v7x
topology: tpu7x:2x2x1
jax: 0.10.0
libtpu: 0.0.40
codegen_flags: <defaults>
</compile_context>

<pallas_src>
import jax
import jax.numpy as jnp
from jax.experimental import pallas as pl
from jax.experimental.pallas import tpu as pltpu


_VMEM_BUDGET = 24 * 1024 * 1024   # target per-step working set (safe on v5e/v6e/v7x)
_VMEM_LIMIT = 48 * 1024 * 1024    # explicit scoped-VMEM request


# ----------------------------- kernels -----------------------------

def _se_fused_kernel(x_ref, w1t_ref, w2t_ref, o_ref):
    """One grid step owns (b_tile, C, L): squeeze + excitation + scale, resident."""
    x = x_ref[...]                                                 # input dtype
    # squeeze: mean over L with f32 accumulation (lane-axis reduce on the XLU)
    y = jnp.sum(x, axis=-1, dtype=jnp.float32) / jnp.float32(x.shape[-1])     # (bt, C)
    # excitation: tiny bias-free MLP in f32 on the MXU
    h = jnp.maximum(
        jnp.dot(y, w1t_ref[...], preferred_element_type=jnp.float32), 0.0)    # (bt, H)
    s = jax.nn.sigmoid(
        jnp.dot(h, w2t_ref[...], preferred_element_type=jnp.float32))         # (bt, C)
    # scale: gate multiply stays in the input dtype (no full-tensor f32 upcast)
    o_ref[...] = x * s.astype(x.dtype)[:, :, None]


def _se_pool_kernel(x_ref, sum_ref):
    """Pass 1: accumulate per-(b, c) sums across the (last, 'arbitrary') L grid axis."""
    @pl.when(pl.program_id(1) == 0)
    def _():
        sum_ref[...] = jnp.zeros_like(sum_ref)
    sum_ref[...] += jnp.sum(x_ref[...], axis=-1, keepdims=True, dtype=jnp.float32)


def _se_scale_kernel(x_ref, s_ref, o_ref):
    """Pass 2: elementwise gate; s_ref is (bt, C, 1) and broadcasts over the L lanes."""
    x = x_ref[...]
    o_ref[...] = x * s_ref[...].astype(x.dtype)


# ----------------------------- wrapper -----------------------------

def _largest_divisor(n, cap):
    cap = int(max(1, min(n, cap)))
    for d in range(cap, 0, -1):
        if n % d == 0:
            return d
    return 1


def se_layer(x, w1t, w2t, *, force_two_pass=False, b_tile=None, l_tile=None):
    """x: (B, C, L); w1t: (C, H) = fc1.weight.T; w2t: (H, C) = fc2.weight.T."""
    B, C, L = x.shape
    C_, H = w1t.shape
    assert C_ == C and w2t.shape == (H, C)
    itemsize = jnp.dtype(x.dtype).itemsize

    slab = C * L * itemsize                      # one batch's (C, L) tile in bytes
    fused_fits = (4 * slab) <= _VMEM_BUDGET      # in+out tiles, double-buffered, bt>=1

    if fused_fits and not force_two_pass:
        # ---------- fused single pass: grid over batch tiles ----------
        if b_tile is None:
            cap = max(1, _VMEM_BUDGET // (4 * slab))
            if B >= 2:
                cap = min(cap, B // 2)           # >= 2 grid steps: v7x 2-TC + pipelining
            bt = _largest_divisor(B, cap)
        else:
            bt = int(b_tile)
        assert B % bt == 0
        nb = B // bt

        cost = pl.CostEstimate(
            flops=2 * B * C * L + 4 * B * C * H,
            transcendentals=B * C,
            bytes_accessed=2 * B * C * L * itemsize,
        )
        return pl.pallas_call(
            _se_fused_kernel,
            out_shape=jax.ShapeDtypeStruct(x.shape, x.dtype),
            grid_spec=pltpu.PrefetchScalarGridSpec(
                num_scalar_prefetch=0,
                grid=(nb,),
                in_specs=[
                    pl.BlockSpec((bt, C, L), lambda b: (b, 0, 0)),
                    pl.BlockSpec((C, H), lambda b: (0, 0)),   # constant block -> no re-DMA
                    pl.BlockSpec((H, C), lambda b: (0, 0)),
                ],
                out_specs=pl.BlockSpec((bt, C, L), lambda b: (b, 0, 0)),
            ),
            compiler_params=pltpu.CompilerParams(
                dimension_semantics=("parallel",),
                vmem_limit_bytes=_VMEM_LIMIT,
            ),
            cost_estimate=cost,
        )(x, w1t, w2t)

    # ---------- two-pass path: L is tiled ----------
    if l_tile is None:
        lt = L
        for cand in (1024, 512, 384, 256, 128):
            if L % cand == 0:
                lt = cand
                break
    else:
        lt = int(l_tile)
    assert L % lt == 0, "l_tile must divide L (or leave l_tile=None)"
    nl = L // lt

    if b_tile is None:
        per_b = 4 * C * lt * itemsize
        cap = max(1, _VMEM_BUDGET // per_b)
        if B >= 2:
            cap = min(cap, B // 2)
        bt = _largest_divisor(B, cap)
    else:
        bt = int(b_tile)
    assert B % bt == 0
    nb = B // bt

    # pass 1: per-(b, c) sums, reduction axis last + "arbitrary", accumulated in the
    # revisited (bt, C, 1) output block.  The output itself is tiny (B*C*4 bytes).
    sums = pl.pallas_call(
        _se_pool_kernel,
        out_shape=jax.ShapeDtypeStruct((B, C, 1), jnp.float32),
        grid_spec=pltpu.PrefetchScalarGridSpec(
            num_scalar_prefetch=0,
            grid=(nb, nl),
            in_specs=[pl.BlockSpec((bt, C, lt), lambda b, l: (b, 0, l))],
            out_specs=pl.BlockSpec((bt, C, 1), lambda b, l: (b, 0, 0)),
        ),
        compiler_params=pltpu.CompilerParams(
            dimension_semantics=("parallel", "arbitrary"),
            vmem_limit_bytes=_VMEM_LIMIT,
        ),
        cost_estimate=pl.CostEstimate(
            flops=B * C * L, transcendentals=0,
            bytes_accessed=B * C * L * itemsize + B * C * 4),
    )(x)

    # excitation MLP on the tiny (B, C) pooled matrix: plain JAX (negligible FLOPs;
    # keeps tiny, mostly-wasted MXU GEMMs out of the per-tile critical path).
    y = sums[:, :, 0] / jnp.float32(L)
    h = jnp.maximum(jnp.dot(y, w1t.astype(jnp.float32),
                            preferred_element_type=jnp.float32), 0.0)
    s = jax.nn.sigmoid(jnp.dot(h, w2t.astype(jnp.float32),
                               preferred_element_type=jnp.float32))
    s = s[:, :, None]                                              # (B, C, 1) f32

    # pass 2: elementwise gate, input dtype, lane-dense L tiles
    return pl.pallas_call(
        _se_scale_kernel,
        out_shape=jax.ShapeDtypeStruct(x.shape, x.dtype),
        grid_spec=pltpu.PrefetchScalarGridSpec(
            num_scalar_prefetch=0,
            grid=(nb, nl),
            in_specs=[
                pl.BlockSpec((bt, C, lt), lambda b, l: (b, 0, l)),
                pl.BlockSpec((bt, C, 1), lambda b, l: (b, 0, 0)),
            ],
            out_specs=pl.BlockSpec((bt, C, lt), lambda b, l: (b, 0, l)),
        ),
        compiler_params=pltpu.CompilerParams(
            dimension_semantics=("parallel", "parallel"),
            vmem_limit_bytes=_VMEM_LIMIT,
        ),
        cost_estimate=pl.CostEstimate(
            flops=B * C * L, transcendentals=0,
            bytes_accessed=2 * B * C * L * itemsize),
    )(x, s)


# ----------------------------- reference & test -----------------------------

def _reference(x, w1t, w2t):
    xf = x.astype(jnp.float32)
    y = jnp.mean(xf, axis=-1)
    h = jnp.maximum(y @ w1t.astype(jnp.float32), 0.0)
    s = jax.nn.sigmoid(h @ w2t.astype(jnp.float32))
    return (x * s.astype(x.dtype)[:, :, None]).astype(x.dtype)


if __name__ == "__main__":
    key = jax.random.PRNGKey(0)
    kx, k1, k2, kx2, kx3 = jax.random.split(key, 5)

    # SELayer(channel=64, reduction=16) -> hidden = 4; x: (B=2, C=64, L=16), f32.
    B, C, L, reduction = 2, 64, 16, 16
    H = C // reduction

    x = jax.random.normal(kx, (B, C, L), dtype=jnp.float32)
    # PyTorch Linear weights: fc1.weight (H, C), fc2.weight (C, H); pass transposed.
    w1 = jax.random.uniform(k1, (H, C), minval=-1.0, maxval=1.0) / jnp.sqrt(C)
    w2 = jax.random.uniform(k2, (C, H), minval=-1.0, maxval=1.0) / jnp.sqrt(H)
    w1t, w2t = w1.T, w2.T

    # 1) fused path (full (C, L) resident per grid step)
    out = se_layer(x, w1t, w2t)
    jax.block_until_ready(out)
    ref = _reference(x, w1t, w2t)
    assert out.shape == x.shape and out.dtype == x.dtype
    assert jnp.allclose(out, ref, atol=1e-5, rtol=1e-5)

    # 2) tiled two-pass path (forced): larger L, lane-dense 128-wide L tiles,
    #    multi-step accumulation over the "arbitrary" reduction axis.
    x2 = jax.random.normal(kx2, (4, C, 512), dtype=jnp.float32)
    out2 = se_layer(x2, w1t, w2t, force_two_pass=True, l_tile=128)
    jax.block_until_ready(out2)
    ref2 = _reference(x2, w1t, w2t)
    assert jnp.allclose(out2, ref2, atol=1e-5, rtol=1e-5)

    # 3) bf16 input: pooling accumulates in f32, gate multiply stays in bf16.
    x3 = jax.random.normal(kx3, (2, C, 256), dtype=jnp.bfloat16)
    out3 = se_layer(x3, w1t, w2t)
    jax.block_until_ready(out3)
    ref3 = _reference(x3, w1t, w2t)
    assert out3.dtype == jnp.bfloat16
    assert jnp.allclose(out3.astype(jnp.float32), ref3.astype(jnp.float32),
                        atol=2e-2, rtol=2e-2)

    print("KERNEL_OK")
</pallas_src>

<mosaic_0001>
module attributes {stable_mosaic.version = 11 : i64} {
  func.func @_se_fused_kernel(%arg0: i32, %arg1: memref<1x64x16xf32, #tpu.memory_space<vmem>>, %arg2: memref<64x4xf32, #tpu.memory_space<vmem>>, %arg3: memref<4x64xf32, #tpu.memory_space<vmem>>, %arg4: memref<1x64x16xf32, #tpu.memory_space<vmem>>) attributes {dimension_semantics = [#tpu.dimension_semantics<parallel>], iteration_bounds = array<i64: 2>, scalar_prefetch = 0 : i64, scratch_operands = 0 : i64, tpu.core_type = #tpu.core_type<tc>, window_params = [{transform_indices = @transform_0, window_bounds = array<i64: 1, 64, 16>}, {pipeline_mode = #tpu.pipeline_mode<synchronous>, transform_indices = @transform_1, window_bounds = array<i64: 64, 4>}, {pipeline_mode = #tpu.pipeline_mode<synchronous>, transform_indices = @transform_2, window_bounds = array<i64: 4, 64>}, {transform_indices = @transform_3, window_bounds = array<i64: 1, 64, 16>}]} {
    %c0 = arith.constant 0 : index
    %c0_0 = arith.constant 0 : index
    %c0_1 = arith.constant 0 : index
    %0 = vector.load %arg1[%c0, %c0_0, %c0_1] : memref<1x64x16xf32, #tpu.memory_space<vmem>>, vector<1x64x16xf32>
    %cst = arith.constant dense<0.000000e+00> : vector<1x64xf32>
    %1 = vector.multi_reduction <add>, %0, %cst [2] : vector<1x64x16xf32> to vector<1x64xf32>
    %cst_2 = arith.constant 1.600000e+01 : f32
    %2 = vector.broadcast %cst_2 : f32 to vector<1x64xf32>
    %3 = arith.divf %1, %2 : vector<1x64xf32>
    %c0_3 = arith.constant 0 : index
    %c0_4 = arith.constant 0 : index
    %4 = vector.load %arg2[%c0_3, %c0_4] : memref<64x4xf32, #tpu.memory_space<vmem>>, vector<64x4xf32>
    %cst_5 = arith.constant dense<0.000000e+00> : vector<1x4xf32>
    %5 = tpu.matmul %3, %4, %cst_5 {dimension_numbers = #tpu.dot_dimension_numbers<[1], [0], [0], [1], [0, 0, 1, 1], [], []>} : vector<1x64xf32>, vector<64x4xf32>, vector<1x4xf32> -> vector<1x4xf32>
    %cst_6 = arith.constant 0.000000e+00 : f32
    %6 = vector.broadcast %cst_6 : f32 to vector<1x4xf32>
    %7 = arith.maximumf %5, %6 : vector<1x4xf32>
    %c0_7 = arith.constant 0 : index
    %c0_8 = arith.constant 0 : index
    %8 = vector.load %arg3[%c0_7, %c0_8] : memref<4x64xf32, #tpu.memory_space<vmem>>, vector<4x64xf32>
    %cst_9 = arith.constant dense<0.000000e+00> : vector<1x64xf32>
    %9 = tpu.matmul %7, %8, %cst_9 {dimension_numbers = #tpu.dot_dimension_numbers<[1], [0], [0], [1], [0, 0, 1, 1], [], []>} : vector<1x4xf32>, vector<4x64xf32>, vector<1x64xf32> -> vector<1x64xf32>
    %10 = arith.negf %9 : vector<1x64xf32>
    %11 = math.exp %10 : vector<1x64xf32>
    %cst_10 = arith.constant 1.000000e+00 : f32
    %12 = vector.broadcast %cst_10 : f32 to vector<1x64xf32>
    %13 = arith.addf %12, %11 : vector<1x64xf32>
    %14 = arith.divf %12, %13 : vector<1x64xf32>
    %15 = vector.shape_cast %14 : vector<1x64xf32> to vector<1x64x1xf32>
    %16 = vector.broadcast %15 : vector<1x64x1xf32> to vector<1x64x16xf32>
    %17 = arith.mulf %0, %16 : vector<1x64x16xf32>
    %c0_11 = arith.constant 0 : index
    %c0_12 = arith.constant 0 : index
    %c0_13 = arith.constant 0 : index
    %18 = vector.load %arg4[%c0_11, %c0_12, %c0_13] : memref<1x64x16xf32, #tpu.memory_space<vmem>>, vector<1x64x16xf32>
    tpu.vector_store %arg4[%c0_11, %c0_12, %c0_13], %17 {strides = array<i32>} : memref<1x64x16xf32, #tpu.memory_space<vmem>>, vector<1x64x16xf32>,
    return
  }
  func.func @transform_0(%arg0: i32) -> (i32, i32, i32) {
    %c0_i32 = arith.constant 0 : i32
    %c0_i32_0 = arith.constant 0 : i32
    %c0_i32_1 = arith.constant 0 : i32
    return %arg0, %c0_i32, %c0_i32_0 : i32, i32, i32
  }
  func.func @transform_1(%arg0: i32) -> (i32, i32) {
    %c0_i32 = arith.constant 0 : i32
    %c0_i32_0 = arith.constant 0 : i32
    %c0_i32_1 = arith.constant 0 : i32
    return %c0_i32, %c0_i32_0 : i32, i32
  }
  func.func @transform_2(%arg0: i32) -> (i32, i32) {
    %c0_i32 = arith.constant 0 : i32
    %c0_i32_0 = arith.constant 0 : i32
    %c0_i32_1 = arith.constant 0 : i32
    return %c0_i32, %c0_i32_0 : i32, i32
  }
  func.func @transform_3(%arg0: i32) -> (i32, i32, i32) {
    %c0_i32 = arith.constant 0 : i32
    %c0_i32_0 = arith.constant 0 : i32
    %c0_i32_1 = arith.constant 0 : i32
    return %arg0, %c0_i32, %c0_i32_0 : i32, i32, i32
  }
}

</mosaic_0001>

<bundles_post_ra>
// kernel: tpu_custom_call.1
= control target key start
LH: loop header
LB: loop body
LE: loop exit
PB: predicated region body
PF: predicated region fallthrough
CT: control target
= control target key end

     0   :  { %s659_s12 = smov 0   ;;  %s769_s0 = inlined_call_operand.vmem [shape: f32[2,64,16], index: 0, kind: input, shape index: {}]   ;;  %s770_s1 = inlined_call_operand.vmem [shape: f32[64,4], index: 1, kind: input, shape index: {}]   ;;  %s771_s2 = inlined_call_operand.vmem [shape: f32[4,64], index: 2, kind: input, shape index: {}]   ;;  %s772_s3 = inlined_call_operand.vmem [shape: f32[2,64,16], index: 3, kind: output, shape index: {}]  }
   0x1 LB: > { %s549_s13 = sadd.s32 4294967295, %s634_s12   ;;  %p553_p0 = scmp.ge.s32.totalorder %s634_s12, 1  ;;  %s634_s12 = sphi %s659_s12, %s13_s12  }
   0x2   : > { %p137_p1 = scmp.lt.s32.totalorder %s634_s12, 3 }
   0x4   : > { %p138_p2 = pnand %p553_p0, %p137_p1 }
   0x5   : > { %p161_p3 = scmp.lt.s32.totalorder (!%p138_p2), %s549_s13, 1  ;;  %vm179_vm0 = vcmask (!%p138_p2), 130048   ;;  %v213_v16 = vld [vmem:[%s770_s1] sm:$0xff] (!%p138_p2)  ;;  %v214_v17 = vld [vmem:[%s770_s1 + $0x8] sm:$0xff] (!%p138_p2)  ;;  %v636_v19 = vmov (!%p138_p2), 0.0|0.0   ;;  %v215_v20 = vld [vmem:[%s770_s1 + $0x10] sm:$0xff] (!%p138_p2)  ;;  %v229_v30 = vlaneseq (!%p138_p2) }
   0x6   : > { %141 = sbr.rel (%p138_p2) target bundleno = 766 (0x2fe), region = 32  ;;  %v602_v18 = vpack.c.bf16 (!%p138_p2), %v214_v17, %v213_v16  ;;  %601 = vmatprep.subr.bf16.mxu0 (!%p138_p2), %v636_v19  ;;  %v216_v21 = vld [vmem:[%s770_s1 + $0x18] sm:$0xff] (!%p138_p2)  ;;  %v217_v23 = vld [vmem:[%s770_s1 + $0x20] sm:$0xff] (!%p138_p2)  ;;  %v218_v24 = vld [vmem:[%s770_s1 + $0x28] sm:$0xff] (!%p138_p2)  ;;  %vm637_vm1 = vmmov (!%p138_p2), 0   ;;  %v638_v29 = vmov (!%p138_p2), 0.0  }
   0x7   : > { %v605_v22 = vpack.c.bf16 (!%p138_p2), %v216_v21, %v215_v20  ;;  %v608_v25 = vpack.c.bf16 (!%p138_p2), %v218_v24, %v217_v23  ;;  %v219_v26 = vld [vmem:[%s770_s1 + $0x30] sm:$0xff] (!%p138_p2)  ;;  %v220_v27 = vld [vmem:[%s770_s1 + $0x38] sm:$0xff] (!%p138_p2)  ;;  %593 = vmatprep.mubr.msk.f32.mxu0 (!%p138_p2), %vm637_vm1, %v638_v29  ;;  %596 = vmatprep.subr.mxu1 (!%p138_p2), %v638_v29  ;;  %v230_v31 = vand.u32 (!%p138_p2), 127, %v229_v30  ;;  %v731_v32 = vshrl.u32 (!%p138_p2), %v229_v30, 7  ;;  %v358_v23 = vld [vmem:[%s771_s2] sm:$0xf] (!%p138_p2) }
   0x8   : > { %603 = vmatpush3.bf16.msra.mxu0 (!%p138_p2), %v602_v18  ;;  %v611_v28 = vpack.c.bf16 (!%p138_p2), %v220_v27, %v219_v26  ;;  %598 = vmatprep.mubr.msk.f32.mxu1 (!%p138_p2), %vm637_vm1, %v638_v29  ;;  %vm240_vm2 = vcmask (!%p138_p2), 130112   ;;  %vm247_vm3 = vcmask (!%p138_p2), 195712   ;;  %vm254_vm4 = vcmask (!%p138_p2), 261312  }
   0x9   : > { %604 = vmatprep.subr.bf16.mxu0 (!%p138_p2), %v636_v19  ;;  %v235_v33 = vadd.s32 (!%p138_p2), 4294967288, %v230_v31  ;;  %v249_v34 = vadd.s32 (!%p138_p2), 4294967272, %v230_v31  ;;  %v242_v36 = vadd.s32 (!%p138_p2), 4294967280, %v230_v31  ;;  %v256_v38 = vadd.s32 (!%p138_p2), 4294967264, %v230_v31 }
   0xa   : > { %v233_v39 = vsub.s32 (!%p138_p2), %v230_v31, %v731_v32  ;;  %v263_v47 = vadd.s32 (!%p138_p2), 4294967256, %v230_v31  ;;  %v270_v51 = vadd.s32 (!%p138_p2), 4294967248, %v230_v31  ;;  %v277_v55 = vadd.s32 (!%p138_p2), 4294967240, %v230_v31 }
   0xb   : > { %v238_v41 = vsub.s32 (!%p138_p2), %v235_v33, %v731_v32  ;;  %v252_v42 = vsub.s32 (!%p138_p2), %v249_v34, %v731_v32  ;;  %v245_v43 = vsub.s32 (!%p138_p2), %v242_v36, %v731_v32  ;;  %v259_v50 = vsub.s32 (!%p138_p2), %v256_v38, %v731_v32 }
   0xc   : > { %606 = vmatpush3.bf16.msra.mxu0 (!%p138_p2), %v605_v22  ;;  %v266_v58 = vsub.s32 (!%p138_p2), %v263_v47, %v731_v32  ;;  %vm261_vm5 = vcmask (!%p138_p2), 326912   ;;  %vm268_vm6 = vcmask (!%p138_p2), 392512   ;;  %vm275_vm7 = vcmask (!%p138_p2), 458112  }
   0xd   : > { %s774_s13 = smov (!%p161_p3, %s549_s13), 1  ;;  %607 = vmatprep.subr.bf16.mxu0 %v636_v19  ;;  %vm282_vm8 = vcmask 523712   ;;  %vm284_vm9 = vcmask 523264   ;;  %vm363_vm10 = vcmask 1043456   ;;  %vm359_vm11 = vcmask 31744  }
   0xe   : > { %s564_s14 = sshll.u32 %s774_s13, 6  ;;  %597 = vmatpush3.msk.msra.mxu1 %vm363_vm10, %v358_v23  ;;  %v445_v33 = vsub.s32 0, %v731_v32 }
   0xf   : > { %s165_s17 = scalar_lea.vmem %s769_s0, %s564_s14  ;;  %s170_s11 = scalar_lea.vmem %s772_s3, %s564_s14 }
  0x10   : > { %v675_v0 = vld [vmem:[%s165_s17] sm:$0xff]  ;;  %v677_v1 = vld [vmem:[%s165_s17 + $0x10] sm:$0xff]  ;;  %v679_v2 = vld [vmem:[%s165_s17 + $0x8] sm:$0xff]  ;;  %609 = vmatpush3.bf16.msra.mxu0 %v608_v25 }
  0x11   : > { %v180_v3 = vsel %vm179_vm0, %v675_v0, 0.0  ;;  %v186_v4 = vsel %vm179_vm0, %v677_v1, 0.0  ;;  %v685_v5 = vld [vmem:[%s165_s17 + $0x18] sm:$0xff]  ;;  %v183_v6 = vsel %vm179_vm0, %v679_v2, 0.0  ;;  %v691_v8 = vld [vmem:[%s165_s17 + $0x20] sm:$0xff]  ;;  %v693_v9 = vld [vmem:[%s165_s17 + $0x28] sm:$0xff]  ;;  %610 = vmatprep.subr.bf16.mxu0 %v636_v19 }
  0x12   : > { %181 = vadd.xlane.f32.xlu0 %v180_v3  ;;  %187 = vadd.xlane.f32.xlu1 %v186_v4  ;;  %v189_v7 = vsel %vm179_vm0, %v685_v5, 0.0  ;;  %v192_v10 = vsel %vm179_vm0, %v691_v8, 0.0  ;;  %v195_v11 = vsel %vm179_vm0, %v693_v9, 0.0  ;;  %v699_v12 = vld [vmem:[%s165_s17 + $0x30] sm:$0xff]  ;;  %v701_v13 = vld [vmem:[%s165_s17 + $0x38] sm:$0xff] }
  0x13   : > { %v198_v14 = vsel %vm179_vm0, %v699_v12, 0.0  ;;  %v201_v15 = vsel %vm179_vm0, %v701_v13, 0.0 }
  0x14   : > { %612 = vmatpush3.bf16.msra.mxu0 %v611_v28 }
  0x16   : > { %184 = vadd.xlane.f32.xlu0 %v183_v6  ;;  %190 = vadd.xlane.f32.xlu1 %v189_v7  ;;  %v273_v6 = vsub.s32 %v270_v51, %v731_v32  ;;  %v280_v7 = vsub.s32 %v277_v55, %v731_v32 }
  0x1a   : > { %193 = vadd.xlane.f32.xlu0 %v192_v10  ;;  %196 = vadd.xlane.f32.xlu1 %v195_v11 }
  0x1e   : > { %199 = vadd.xlane.f32.xlu0 %v198_v14  ;;  %202 = vadd.xlane.f32.xlu1 %v201_v15 }
  0x9f   : > { %v182_v35 = vpop.xlane.xlu0 %181  ;;  %v188_v37 = vpop.xlane.xlu1 %187 }
  0xa0   : > { %v205_v40 = vmul.f32 0.0625, %v182_v35  ;;  %v207_v44 = vmul.f32 0.0625, %v188_v37 }
  0xa2   : > { %v234_v52 = vrot.slane %v205_v40, %v233_v39  ;;  %v246_v56 = vrot.slane %v207_v44, %v245_v43 }
  0xa3   : > { %v185_v45 = vpop.xlane.xlu0 %184  ;;  %v191_v46 = vpop.xlane.xlu1 %190 }
  0xa4   : > { %v206_v48 = vmul.f32 0.0625, %v185_v45  ;;  %v208_v49 = vmul.f32 0.0625, %v191_v46 }
  0xa6   : > { %v239_v53 = vrot.slane %v206_v48, %v238_v41  ;;  %v253_v54 = vrot.slane %v208_v49, %v252_v42 }
  0xa7   : > { %v194_v57 = vpop.xlane.xlu0 %193  ;;  %v197_v59 = vpop.xlane.xlu1 %196 }
  0xa8   : > { %v241_v60 = vsel %vm240_vm2, %v239_v53, %v234_v52  ;;  %v209_v61 = vmul.f32 0.0625, %v194_v57  ;;  %v210_v62 = vmul.f32 0.0625, %v197_v59 }
  0xa9   : > { %v248_v63 = vsel %vm247_vm3, %v246_v56, %v241_v60 }
  0xaa   : > { %v255_v3 = vsel %vm254_vm4, %v253_v54, %v248_v63  ;;  %v260_v4 = vrot.slane %v209_v61, %v259_v50  ;;  %v267_v10 = vrot.slane %v210_v62, %v266_v58 }
  0xab   : > { %v200_v11 = vpop.xlane.xlu0 %199  ;;  %v203_v14 = vpop.xlane.xlu1 %202 }
  0xac   : > { %v262_v15 = vsel %vm261_vm5, %v260_v4, %v255_v3  ;;  %v211_v16 = vmul.f32 0.0625, %v200_v11  ;;  %v212_v17 = vmul.f32 0.0625, %v203_v14 }
  0xad   : > { %v269_v20 = vsel %vm268_vm6, %v267_v10, %v262_v15 }
  0xae   : > { %v274_v18 = vrot.slane %v211_v16, %v273_v6  ;;  %v281_v19 = vrot.slane %v212_v17, %v280_v7 }
  0xb0   : > { %v276_v21 = vsel %vm275_vm7, %v274_v18, %v269_v20 }
  0xb1   : > { %v283_v22 = vsel %vm282_vm8, %v281_v19, %v276_v21 }
  0xb2   : > { %594 = vmatmul.mubr.msk.f32.vlgmr.msra.gmra.mrb[0].mxu0 %vm284_vm9, %v283_v22 }
 0x185   : > { %v353_v24 = vpop.f32.mrb[0].mxu0 }
 0x186   : > { %v357_v25 = vmax.f32 %v353_v24, 0.0  ;;  %v595_v26 = vpop.f32.mrb[1].mxu0 }
 0x188   : > { %599 = vmatmul.mubr.msk.f32.vlgmr.msra.gmra.mrb[0].mxu1 %vm359_vm11, %v357_v25 }
 0x25b   : > { %v433_v27 = vpop.f32.mrb[0].mxu1 }
 0x25c   : > { %v561_v28 = vmul.f32 -1.442695, %v433_v27  ;;  %v600_v29 = vpop.f32.mrb[1].mxu1 }
 0x25e   : > { %624 = vpow2.f32 %v561_v28 }
 0x268   : > { %v625_v30 = vpop.eup %624 }
 0x269   : > { %v440_v31 = vadd.f32 1.0, %v625_v30 }
 0x26b   : > { %626 = vrcp.f32 %v440_v31 }
 0x275   : > { %v627_v34 = vpop.eup %626 }
 0x276   : > { %v446_v35 = vrot.slane %v627_v34, %v445_v33 }
 0x278   : > { %452 = vbcast.lane.b32.xlu1 %v446_v35, 264  ;;  %448 = vbcast.lane.b32.xlu0 %v446_v35, 256 }
 0x27c   : > { %456 = vbcast.lane.b32.xlu1 %v446_v35, 272  ;;  %464 = vbcast.lane.b32.xlu0 %v446_v35, 288 }
 0x280   : > { %460 = vbcast.lane.b32.xlu1 %v446_v35, 280  ;;  %472 = vbcast.lane.b32.xlu0 %v446_v35, 304 }
 0x284   : > { %468 = vbcast.lane.b32.xlu1 %v446_v35, 296 }
 0x288   : > { %476 = vbcast.lane.b32.xlu1 %v446_v35, 312 }
 0x2ea   : > { %v453_v36 = vpop.permute.xlu1 %452  ;;  %v449_v37 = vpop.permute.xlu0 %448 }
 0x2eb   : > { %v479_v38 = vmul.f32 %v453_v36, %v679_v2  ;;  %v478_v32 = vmul.f32 %v449_v37, %v675_v0 }
 0x2ed   : > { %487 = vst.msk [vmem:[%s170_s11 + $0x8] sm:$0xff] %vm179_vm0, %v479_v38  ;;  %486 = vst.msk [vmem:[%s170_s11] sm:$0xff] %vm179_vm0, %v478_v32 }
 0x2ee   : > { %v457_v39 = vpop.permute.xlu1 %456  ;;  %v465_v40 = vpop.permute.xlu0 %464 }
 0x2ef   : > { %v480_v41 = vmul.f32 %v457_v39, %v677_v1  ;;  %v482_v42 = vmul.f32 %v465_v40, %v691_v8 }
 0x2f1   : > { %488 = vst.msk [vmem:[%s170_s11 + $0x10] sm:$0xff] %vm179_vm0, %v480_v41  ;;  %490 = vst.msk [vmem:[%s170_s11 + $0x20] sm:$0xff] %vm179_vm0, %v482_v42 }
 0x2f2   : > { %v461_v43 = vpop.permute.xlu1 %460  ;;  %v473_v44 = vpop.permute.xlu0 %472 }
 0x2f3   : > { %v481_v2 = vmul.f32 %v461_v43, %v685_v5  ;;  %v484_v0 = vmul.f32 %v473_v44, %v699_v12 }
 0x2f5   : > { %489 = vst.msk [vmem:[%s170_s11 + $0x18] sm:$0xff] %vm179_vm0, %v481_v2  ;;  %492 = vst.msk [vmem:[%s170_s11 + $0x30] sm:$0xff] %vm179_vm0, %v484_v0 }
 0x2f6   : > { %v469_v45 = vpop.permute.xlu1 %468 }
 0x2f7   : > { %v483_v46 = vmul.f32 %v469_v45, %v693_v9 }
 0x2f9   : > { %491 = vst.msk [vmem:[%s170_s11 + $0x28] sm:$0xff] %vm179_vm0, %v483_v46 }
 0x2fa   : > { %v477_v1 = vpop.permute.xlu1 %476 }
 0x2fb   : > { %v485_v8 = vmul.f32 %v477_v1, %v701_v13 }
 0x2fd   : > { %493 = vst.msk [vmem:[%s170_s11 + $0x38] sm:$0xff] %vm179_vm0, %v485_v8 }
 0x2fe PF: > { %s13_s12 = sadd.s32 1, %s634_s12  }
 0x2ff   : > { %p10_p4 = scmp.ge.s32.totalorder %s13_s12, 4  }
 0x301   :  { %12 = sbr.rel (!%p10_p4) target bundleno = 1 (0x1), region = 62 }

</bundles_post_ra>
